<compile_context>
chip_gen: v7x
topology: tpu7x:2x2x1
jax: 0.10.0
libtpu: 0.0.40
codegen_flags: <defaults>
</compile_context>

<pallas_src>
import functools

import jax
import jax.numpy as jnp
from jax.experimental import pallas as pl
from jax.experimental.pallas import tpu as pltpu


# ---------------------------------------------------------------------------
# Kernels
# ---------------------------------------------------------------------------

def _fused_center_kernel(x_ref, o_ref, *, inv_n):
    """Single pass: whole (padded) slab resident in VMEM; sum -> subtract."""
    xf = x_ref[...].astype(jnp.float32)
    mean = jnp.sum(xf) * inv_n          # zero padding adds 0; inv_n uses true n
    o_ref[...] = (xf - mean).astype(o_ref.dtype)


def _partial_sum_kernel(x_ref, sum_ref):
    """Phase 0: accumulate an f32 global sum over all tiles into an SMEM scalar."""
    @pl.when(pl.program_id(0) == 0)
    def _():
        sum_ref[0, 0] = jnp.float32(0.0)

    sum_ref[0, 0] += jnp.sum(x_ref[...].astype(jnp.float32))


def _subtract_mean_kernel(sum_ref, x_ref, o_ref, *, inv_n):
    """Phase 1: o = x - sum * (1/n), with the f32 sum scalar resident in SMEM."""
    mean = sum_ref[0, 0] * inv_n
    o_ref[...] = (x_ref[...].astype(jnp.float32) - mean).astype(o_ref.dtype)


# ---------------------------------------------------------------------------
# Wrapper
# ---------------------------------------------------------------------------

def centered_layer(x, *, tile_bytes=2 * 1024 * 1024, donate_input=False):
    """x - x.mean() over all elements, preserving shape/dtype (PyTorch semantics).

    tile_bytes:   per-tile VMEM budget for the streaming path (input and output
                  tiles are each double-buffered, so peak VMEM ~= 4*tile_bytes).
    donate_input: alias the (flattened) input buffer to the subtract output.
                  Only enable when the caller no longer needs x.
    """
    orig_shape = x.shape
    orig_dtype = x.dtype
    n = x.size
    itemsize = jnp.dtype(orig_dtype).itemsize
    inv_n = 1.0 / float(n)

    # Lane-dense slab: last dim a wide multiple of 128 for unmasked full-width stores.
    lanes = 512
    bytes_per_row = lanes * itemsize
    max_tile_rows = max(8, (tile_bytes // bytes_per_row) // 8 * 8)

    rows = pl.cdiv(n, lanes)
    if rows <= max_tile_rows:
        tile_rows = rows          # single tile == full array dims
        rows_padded = rows
    else:
        tile_rows = max_tile_rows
        rows_padded = pl.cdiv(rows, tile_rows) * tile_rows
    num_tiles = rows_padded // tile_rows

    flat = x.reshape(-1)
    pad = rows_padded * lanes - n
    if pad:
        # Zero padding: contributes nothing to the sum; divisor is the true n.
        flat = jnp.pad(flat, (0, pad))
    x2d = flat.reshape(rows_padded, lanes)

    cparams = pltpu.CompilerParams(vmem_limit_bytes=32 * 1024 * 1024)

    if num_tiles == 1:
        # ---- Fused single-pass path (1 read + 1 write, one launch) ---------
        extra_kwargs = {"input_output_aliases": {0: 0}} if donate_input else {}
        out2d = pl.pallas_call(
            functools.partial(_fused_center_kernel, inv_n=inv_n),
            out_shape=jax.ShapeDtypeStruct((rows_padded, lanes), orig_dtype),
            in_specs=[pl.BlockSpec(memory_space=pltpu.MemorySpace.VMEM)],
            out_specs=pl.BlockSpec(memory_space=pltpu.MemorySpace.VMEM),
            compiler_params=cparams,
            **extra_kwargs,
        )(x2d)
    else:
        # ---- Phase 0: global f32 sum (ordered accumulation into SMEM) ------
        total = pl.pallas_call(
            _partial_sum_kernel,
            out_shape=jax.ShapeDtypeStruct((1, 1), jnp.float32),
            grid=(num_tiles,),
            in_specs=[pl.BlockSpec((tile_rows, lanes), lambda i: (i, 0))],
            out_specs=pl.BlockSpec(memory_space=pltpu.MemorySpace.SMEM),
            compiler_params=pltpu.CompilerParams(
                dimension_semantics=("arbitrary",),
                vmem_limit_bytes=32 * 1024 * 1024,
            ),
        )(x2d)

        # ---- Phase 1: subtract (mean = sum * 1/n folded into the kernel) ---
        extra_kwargs = {"input_output_aliases": {1: 0}} if donate_input else {}
        out2d = pl.pallas_call(
            functools.partial(_subtract_mean_kernel, inv_n=inv_n),
            out_shape=jax.ShapeDtypeStruct((rows_padded, lanes), orig_dtype),
            grid=(num_tiles,),
            in_specs=[
                pl.BlockSpec(memory_space=pltpu.MemorySpace.SMEM),    # f32 sum
                pl.BlockSpec((tile_rows, lanes), lambda i: (i, 0)),   # x tile
            ],
            out_specs=pl.BlockSpec((tile_rows, lanes), lambda i: (i, 0)),
            compiler_params=pltpu.CompilerParams(
                dimension_semantics=("parallel",),  # megacore TCs split tiles
                vmem_limit_bytes=32 * 1024 * 1024,
            ),
            **extra_kwargs,
        )(total, x2d)

    out = out2d.reshape(-1)
    if pad:
        out = out[:n]
    return out.reshape(orig_shape)


# ---------------------------------------------------------------------------
# Test
# ---------------------------------------------------------------------------

if __name__ == "__main__":
    centered = jax.jit(centered_layer, static_argnames=("tile_bytes", "donate_input"))

    # Primary check: NCHW input matching the module's forward (fused single-tile path).
    key = jax.random.PRNGKey(0)
    x = jax.random.normal(key, (2, 4, 16, 16), dtype=jnp.float32)
    out = jax.block_until_ready(centered(x))
    ref = x - jnp.mean(x)
    assert out.shape == x.shape and out.dtype == x.dtype
    assert jnp.allclose(out, ref, atol=1e-5, rtol=1e-5), "fused-path mismatch"
    assert abs(float(jnp.mean(out))) < 1e-5

    # Secondary check: force the multi-tile + zero-padded two-phase streaming
    # path by shrinking the per-tile byte budget.
    key2 = jax.random.PRNGKey(1)
    x2 = jax.random.normal(key2, (2, 3, 50, 60), dtype=jnp.float32)
    out2 = jax.block_until_ready(centered(x2, tile_bytes=64 * 1024))
    ref2 = x2 - jnp.mean(x2)
    assert out2.shape == x2.shape and out2.dtype == x2.dtype
    assert jnp.allclose(out2, ref2, atol=1e-5, rtol=1e-5), "tiled-path mismatch"
    assert abs(float(jnp.mean(out2))) < 1e-5

    # Tertiary check: multi-tile streaming path at the default tile budget.
    key3 = jax.random.PRNGKey(2)
    x3 = jax.random.normal(key3, (8, 256, 1024), dtype=jnp.float32)
    out3 = jax.block_until_ready(centered(x3))
    ref3 = x3 - jnp.mean(x3)
    assert out3.shape == x3.shape and out3.dtype == x3.dtype
    assert jnp.allclose(out3, ref3, atol=1e-4, rtol=1e-4), "streaming-path mismatch"

    print("KERNEL_OK")
</pallas_src>

<mosaic_0001>
module attributes {stable_mosaic.version = 11 : i64} {
  func.func @_fused_center_kernel(%arg0: memref<4x512xf32, #tpu.memory_space<vmem>>, %arg1: memref<4x512xf32, #tpu.memory_space<vmem>>) attributes {dimension_semantics = [], scalar_prefetch = 0 : i64, scratch_operands = 0 : i64, tpu.core_type = #tpu.core_type<tc>} {
    %c0 = arith.constant 0 : index
    %c0_0 = arith.constant 0 : index
    %0 = vector.load %arg0[%c0, %c0_0] : memref<4x512xf32, #tpu.memory_space<vmem>>, vector<4x512xf32>
    %1 = vector.shape_cast %0 : vector<4x512xf32> to vector<1x4x512xf32>
    %cst = arith.constant dense<0.000000e+00> : vector<1xf32>
    %2 = vector.multi_reduction <add>, %1, %cst [1, 2] : vector<1x4x512xf32> to vector<1xf32>
    %3 = vector.shape_cast %2 : vector<1xf32> to vector<1x1x1xf32>
    %4 = vector.extract %3[0, 0, 0] : f32 from vector<1x1x1xf32>
    %cst_1 = arith.constant 4.8828125E-4 : f32
    %5 = arith.mulf %4, %cst_1 : f32
    %6 = vector.broadcast %5 : f32 to vector<4x512xf32>
    %7 = arith.subf %0, %6 : vector<4x512xf32>
    %c0_2 = arith.constant 0 : index
    %c0_3 = arith.constant 0 : index
    %8 = vector.load %arg1[%c0_2, %c0_3] : memref<4x512xf32, #tpu.memory_space<vmem>>, vector<4x512xf32>
    tpu.vector_store %arg1[%c0_2, %c0_3], %7 {strides = array<i32>} : memref<4x512xf32, #tpu.memory_space<vmem>>, vector<4x512xf32>,
    return
  }
}

</mosaic_0001>

<bundles_post_ra>
// kernel: centered_layer.1
= control target key start
LH: loop header
LB: loop body
LE: loop exit
PB: predicated region body
PF: predicated region fallthrough
CT: control target
= control target key end

     0   :  { %vm16_vm0 = vcmask 1043456   ;;  %s69_s0 = inlined_call_operand.vmem [shape: f32[4,512], index: 0, kind: input, shape index: {}]   ;;  %s70_s1 = inlined_call_operand.vmem [shape: f32[4,512], index: 1, kind: output, shape index: {}]  }
   0x1   :  { %v8_v0 = vld [vmem:[%s69_s0] sm:$0xff]  ;;  %v9_v1 = vld [vmem:[%s69_s0 + $0x8] sm:$0xff] }
   0x2   :  { %v12_v2 = vcombine.high %v8_v0, %v8_v0  ;;  %v13_v3 = vcombine.high %v9_v1, %v9_v1  ;;  %v17_v4 = vsel %vm16_vm0, %v8_v0, 0.0  ;;  %v20_v6 = vsel %vm16_vm0, %v9_v1, 0.0 }
   0x4   :  { %v18_v5 = vsel %vm16_vm0, %v12_v2, 0.0  ;;  %v22_v8 = vsel %vm16_vm0, %v13_v3, 0.0 }
   0x5   :  { %v19_v7 = vadd.f32 %v18_v5, %v17_v4 }
   0x7   :  { %v21_v9 = vadd.f32 %v20_v6, %v19_v7 }
   0x9   :  { %v23_v10 = vadd.f32 %v22_v8, %v21_v9 }
   0xb   :  { %24 = vadd.xlane.f32.xlu0 %v23_v10 }
  0x98   :  { %v25_v11 = vpop.xlane.xlu0 %24 }
  0x99   :  { %v26_v12 = vrot.slane %v25_v11, 4 }
  0x9b   :  { %v27_v13 = vadd.f32 %v26_v12, %v25_v11 }
  0x9d   :  { %v28_v14 = vrot.slane %v27_v13, 2 }
  0x9f   :  { %v29_v15 = vadd.f32 %v28_v14, %v27_v13 }
  0xa1   :  { %v30_v16 = vrot.slane %v29_v15, 1 }
  0xa3   :  { %v31_v17 = vadd.f32 %v30_v16, %v29_v15 }
  0xa5   :  { %43 = vpush %v31_v17 }
  0xd6   :  { %s44_s10 = spop %43 }
  0xd7   :  { %s33_s0 = smul.f32 0.00048828125, %s44_s10 }
  0xd9   :  { %v34_v18 = vstv %s33_s0 }
  0xda   :  { %v35_v19 = vsub.f32 %v8_v0, %v34_v18  ;;  %v36_v20 = vsub.f32 %v9_v1, %v34_v18 }
  0xdc   :  { %37 = vst [vmem:[%s70_s1] sm:$0xff] %v35_v19  ;;  %38 = vst [vmem:[%s70_s1 + $0x8] sm:$0xff] %v36_v20 }

</bundles_post_ra>
